<compile_context>
chip_gen: v7x
topology: tpu7x:2x2x1
jax: 0.10.0
libtpu: 0.0.40
codegen_flags: <defaults>
</compile_context>

<pallas_src>
import functools

import jax
import jax.numpy as jnp
from jax.experimental import pallas as pl
from jax.experimental.pallas import tpu as pltpu


def _round_up(n, m):
    return ((n + m - 1) // m) * m


def ikmlp_kernel(x_ref,
                 w1_ref, b1_ref,
                 w2_ref, b2_ref,
                 w3_ref, b3_ref,
                 w4_ref, b4_ref,
                 o_ref):
    cd = x_ref.dtype  # compute dtype for the MXU operands (bf16 or f32)

    x = x_ref[...]  # (3, TILE_B)

    # fc1 + relu : (64, 3) @ (3, TILE_B) -> (64, TILE_B)   (f32 accumulate)
    h = jnp.dot(w1_ref[...], x, preferred_element_type=jnp.float32) + b1_ref[...]
    h = jnp.maximum(h, 0.0).astype(cd)

    # fc2 + relu : (16, 64) @ (64, TILE_B)
    h = jnp.dot(w2_ref[...], h, preferred_element_type=jnp.float32) + b2_ref[...]
    h = jnp.maximum(h, 0.0).astype(cd)

    # fc3 + relu : (8, 16) @ (16, TILE_B)
    h = jnp.dot(w3_ref[...], h, preferred_element_type=jnp.float32) + b3_ref[...]
    h = jnp.maximum(h, 0.0).astype(cd)

    # fc4 (no activation) : (8, 8) @ (8, TILE_B)  (rows 4..7 of w4/b4 are zero pad)
    h = jnp.dot(w4_ref[...], h, preferred_element_type=jnp.float32) + b4_ref[...]

    o_ref[...] = h.astype(o_ref.dtype)  # (8, TILE_B) lane-dense, unmasked stores


@functools.partial(jax.jit, static_argnames=("tile_b", "compute_dtype"))
def _ikmlp_forward_impl(x, params, tile_b, compute_dtype):
    B = x.shape[0]
    assert tile_b % 128 == 0, "tile_b must be a multiple of the 128-lane width"

    # ---- batch tile selection ------------------------------------------------
    b_lanes = _round_up(B, 128)
    eff_tile = min(tile_b, b_lanes)
    # Prefer >= 2 grid steps when the batch allows it, so the "parallel" batch
    # axis actually splits across both TensorCores on v7x.
    if b_lanes >= 256:
        eff_tile = min(eff_tile, _round_up((b_lanes + 1) // 2, 128))
    Bp = _round_up(B, eff_tile)
    grid = (Bp // eff_tile,)

    # ---- wrapper-side layout plumbing (fused by jit, not in-kernel) ----------
    xt = jnp.pad(x.T, ((0, 0), (0, Bp - B))).astype(compute_dtype)        # (3, Bp)

    w1 = params["w1"].astype(compute_dtype)                               # (64, 3)
    w2 = params["w2"].astype(compute_dtype)                               # (16, 64)
    w3 = params["w3"].astype(compute_dtype)                               # (8, 16)
    w4 = jnp.pad(params["w4"], ((0, 4), (0, 0))).astype(compute_dtype)    # (8, 8)
    b1 = params["b1"].reshape(64, 1).astype(jnp.float32)
    b2 = params["b2"].reshape(16, 1).astype(jnp.float32)
    b3 = params["b3"].reshape(8, 1).astype(jnp.float32)
    b4 = jnp.pad(params["b4"], (0, 4)).reshape(8, 1).astype(jnp.float32)  # (8, 1)

    # ---- advisory cost estimate ----------------------------------------------
    itemsize = jnp.dtype(compute_dtype).itemsize
    flops = 2 * (3 * 64 + 64 * 16 + 16 * 8 + 8 * 8) * Bp
    bytes_accessed = (3 * Bp * itemsize                       # x in
                      + 8 * Bp * 4                            # out
                      + (64 * 3 + 16 * 64 + 8 * 16 + 8 * 8) * itemsize
                      + (64 + 16 + 8 + 8) * 4)                # weights + biases
    cost = pl.CostEstimate(flops=flops, transcendentals=0,
                           bytes_accessed=bytes_accessed)

    # ---- specs -----------------------------------------------------------------
    in_specs = [
        pl.BlockSpec((3, eff_tile), lambda i: (0, i)),   # x tile, pipelined over batch
        pl.BlockSpec((64, 3), lambda i: (0, 0)),         # w1 (VMEM-resident)
        pl.BlockSpec((64, 1), lambda i: (0, 0)),         # b1
        pl.BlockSpec((16, 64), lambda i: (0, 0)),        # w2
        pl.BlockSpec((16, 1), lambda i: (0, 0)),         # b2
        pl.BlockSpec((8, 16), lambda i: (0, 0)),         # w3
        pl.BlockSpec((8, 1), lambda i: (0, 0)),          # b3
        pl.BlockSpec((8, 8), lambda i: (0, 0)),          # w4 (M padded 4 -> 8)
        pl.BlockSpec((8, 1), lambda i: (0, 0)),          # b4 (padded)
    ]
    out_specs = pl.BlockSpec((8, eff_tile), lambda i: (0, i))

    out_t = pl.pallas_call(
        ikmlp_kernel,
        out_shape=jax.ShapeDtypeStruct((8, Bp), jnp.float32),
        grid=grid,
        in_specs=in_specs,
        out_specs=out_specs,
        compiler_params=pltpu.CompilerParams(
            dimension_semantics=("parallel",),
            vmem_limit_bytes=32 * 1024 * 1024,
        ),
        cost_estimate=cost,
    )(xt, w1, b1, w2, b2, w3, b3, w4, b4)

    # Back to the PyTorch (B, 4) convention; drop feature and batch padding.
    return out_t[:4, :B].T


def ikmlp_forward(x, params, *, tile_b=16384, compute_dtype=jnp.bfloat16):
    """x: (B, 3) float32. params: PyTorch-style w_i (out, in) and b_i (out,).

    Returns (B, 4) float32, same semantics as PyTorch IKMLP.forward.
    compute_dtype=jnp.bfloat16 gives single-pass MXU matmuls with f32
    accumulation; pass jnp.float32 for bit-exact f32 behaviour.
    """
    return _ikmlp_forward_impl(x, params, tile_b, compute_dtype)


def init_params(key):
    """PyTorch nn.Linear default init: U(-1/sqrt(fan_in), 1/sqrt(fan_in)).

    Weights stored PyTorch-style as (out_features, in_features).
    """
    dims = [(3, 64), (64, 16), (16, 8), (8, 4)]
    params = {}
    for i, (fan_in, fan_out) in enumerate(dims, start=1):
        key, kw, kb = jax.random.split(key, 3)
        bound = 1.0 / jnp.sqrt(float(fan_in))
        params[f"w{i}"] = jax.random.uniform(
            kw, (fan_out, fan_in), jnp.float32, -bound, bound)
        params[f"b{i}"] = jax.random.uniform(
            kb, (fan_out,), jnp.float32, -bound, bound)
    return params


if __name__ == "__main__":
    key = jax.random.PRNGKey(0)
    key, kx = jax.random.split(key)

    B = 300  # small; exercises batch padding and a 2-step grid
    x = jax.random.normal(kx, (B, 3), dtype=jnp.float32)
    params = init_params(key)

    # Pure-JAX reference (PyTorch nn.Linear semantics: y = x @ W.T + b).
    h = jnp.maximum(x @ params["w1"].T + params["b1"], 0.0)
    h = jnp.maximum(h @ params["w2"].T + params["b2"], 0.0)
    h = jnp.maximum(h @ params["w3"].T + params["b3"], 0.0)
    ref = h @ params["w4"].T + params["b4"]

    # Default fast path: bf16 MXU operands, f32 accumulation (loose tolerance).
    out_fast = jax.block_until_ready(ikmlp_forward(x, params))
    assert out_fast.shape == (B, 4)
    assert jnp.allclose(out_fast, ref, atol=3e-2, rtol=3e-2)

    # Exact-f32 path (tight tolerance).
    out_f32 = jax.block_until_ready(
        ikmlp_forward(x, params, compute_dtype=jnp.float32))
    assert out_f32.shape == (B, 4)
    assert jnp.allclose(out_f32, ref, atol=1e-5, rtol=1e-5)

    print("KERNEL_OK")
</pallas_src>

<mosaic_0001>
module attributes {stable_mosaic.version = 11 : i64} {
  func.func @ikmlp_kernel(%arg0: i32, %arg1: memref<3x256xbf16, #tpu.memory_space<vmem>>, %arg2: memref<64x3xbf16, #tpu.memory_space<vmem>>, %arg3: memref<64x1xf32, #tpu.memory_space<vmem>>, %arg4: memref<16x64xbf16, #tpu.memory_space<vmem>>, %arg5: memref<16x1xf32, #tpu.memory_space<vmem>>, %arg6: memref<8x16xbf16, #tpu.memory_space<vmem>>, %arg7: memref<8x1xf32, #tpu.memory_space<vmem>>, %arg8: memref<8x8xbf16, #tpu.memory_space<vmem>>, %arg9: memref<8x1xf32, #tpu.memory_space<vmem>>, %arg10: memref<8x256xf32, #tpu.memory_space<vmem>>) attributes {dimension_semantics = [#tpu.dimension_semantics<parallel>], iteration_bounds = array<i64: 2>, scalar_prefetch = 0 : i64, scratch_operands = 0 : i64, tpu.core_type = #tpu.core_type<tc>, window_params = [{transform_indices = @transform_0, window_bounds = array<i64: 3, 256>}, {pipeline_mode = #tpu.pipeline_mode<synchronous>, transform_indices = @transform_1, window_bounds = array<i64: 64, 3>}, {pipeline_mode = #tpu.pipeline_mode<synchronous>, transform_indices = @transform_2, window_bounds = array<i64: 64, 1>}, {pipeline_mode = #tpu.pipeline_mode<synchronous>, transform_indices = @transform_3, window_bounds = array<i64: 16, 64>}, {pipeline_mode = #tpu.pipeline_mode<synchronous>, transform_indices = @transform_4, window_bounds = array<i64: 16, 1>}, {pipeline_mode = #tpu.pipeline_mode<synchronous>, transform_indices = @transform_5, window_bounds = array<i64: 8, 16>}, {pipeline_mode = #tpu.pipeline_mode<synchronous>, transform_indices = @transform_6, window_bounds = array<i64: 8, 1>}, {pipeline_mode = #tpu.pipeline_mode<synchronous>, transform_indices = @transform_7, window_bounds = array<i64: 8, 8>}, {pipeline_mode = #tpu.pipeline_mode<synchronous>, transform_indices = @transform_8, window_bounds = array<i64: 8, 1>}, {transform_indices = @transform_9, window_bounds = array<i64: 8, 256>}]} {
    %c0 = arith.constant 0 : index
    %c0_0 = arith.constant 0 : index
    %0 = vector.load %arg1[%c0, %c0_0] : memref<3x256xbf16, #tpu.memory_space<vmem>>, vector<3x256xbf16>
    %c0_1 = arith.constant 0 : index
    %c0_2 = arith.constant 0 : index
    %1 = vector.load %arg2[%c0_1, %c0_2] : memref<64x3xbf16, #tpu.memory_space<vmem>>, vector<64x3xbf16>
    %cst = arith.constant dense<0.000000e+00> : vector<64x256xf32>
    %2 = tpu.matmul %1, %0, %cst {dimension_numbers = #tpu.dot_dimension_numbers<[1], [0], [0], [1], [0, 0, 1, 1], [], []>} : vector<64x3xbf16>, vector<3x256xbf16>, vector<64x256xf32> -> vector<64x256xf32>
    %c0_3 = arith.constant 0 : index
    %c0_4 = arith.constant 0 : index
    %3 = vector.load %arg3[%c0_3, %c0_4] : memref<64x1xf32, #tpu.memory_space<vmem>>, vector<64x1xf32>
    %4 = vector.broadcast %3 : vector<64x1xf32> to vector<64x256xf32>
    %5 = arith.addf %2, %4 : vector<64x256xf32>
    %cst_5 = arith.constant 0.000000e+00 : f32
    %6 = vector.broadcast %cst_5 : f32 to vector<64x256xf32>
    %7 = arith.maximumf %5, %6 : vector<64x256xf32>
    %8 = arith.truncf %7 : vector<64x256xf32> to vector<64x256xbf16>
    %c0_6 = arith.constant 0 : index
    %c0_7 = arith.constant 0 : index
    %9 = vector.load %arg4[%c0_6, %c0_7] : memref<16x64xbf16, #tpu.memory_space<vmem>>, vector<16x64xbf16>
    %cst_8 = arith.constant dense<0.000000e+00> : vector<16x256xf32>
    %10 = tpu.matmul %9, %8, %cst_8 {dimension_numbers = #tpu.dot_dimension_numbers<[1], [0], [0], [1], [0, 0, 1, 1], [], []>} : vector<16x64xbf16>, vector<64x256xbf16>, vector<16x256xf32> -> vector<16x256xf32>
    %c0_9 = arith.constant 0 : index
    %c0_10 = arith.constant 0 : index
    %11 = vector.load %arg5[%c0_9, %c0_10] : memref<16x1xf32, #tpu.memory_space<vmem>>, vector<16x1xf32>
    %12 = vector.broadcast %11 : vector<16x1xf32> to vector<16x256xf32>
    %13 = arith.addf %10, %12 : vector<16x256xf32>
    %cst_11 = arith.constant 0.000000e+00 : f32
    %14 = vector.broadcast %cst_11 : f32 to vector<16x256xf32>
    %15 = arith.maximumf %13, %14 : vector<16x256xf32>
    %16 = arith.truncf %15 : vector<16x256xf32> to vector<16x256xbf16>
    %c0_12 = arith.constant 0 : index
    %c0_13 = arith.constant 0 : index
    %17 = vector.load %arg6[%c0_12, %c0_13] : memref<8x16xbf16, #tpu.memory_space<vmem>>, vector<8x16xbf16>
    %cst_14 = arith.constant dense<0.000000e+00> : vector<8x256xf32>
    %18 = tpu.matmul %17, %16, %cst_14 {dimension_numbers = #tpu.dot_dimension_numbers<[1], [0], [0], [1], [0, 0, 1, 1], [], []>} : vector<8x16xbf16>, vector<16x256xbf16>, vector<8x256xf32> -> vector<8x256xf32>
    %c0_15 = arith.constant 0 : index
    %c0_16 = arith.constant 0 : index
    %19 = vector.load %arg7[%c0_15, %c0_16] : memref<8x1xf32, #tpu.memory_space<vmem>>, vector<8x1xf32>
    %20 = vector.broadcast %19 : vector<8x1xf32> to vector<8x256xf32>
    %21 = arith.addf %18, %20 : vector<8x256xf32>
    %cst_17 = arith.constant 0.000000e+00 : f32
    %22 = vector.broadcast %cst_17 : f32 to vector<8x256xf32>
    %23 = arith.maximumf %21, %22 : vector<8x256xf32>
    %24 = arith.truncf %23 : vector<8x256xf32> to vector<8x256xbf16>
    %c0_18 = arith.constant 0 : index
    %c0_19 = arith.constant 0 : index
    %25 = vector.load %arg8[%c0_18, %c0_19] : memref<8x8xbf16, #tpu.memory_space<vmem>>, vector<8x8xbf16>
    %cst_20 = arith.constant dense<0.000000e+00> : vector<8x256xf32>
    %26 = tpu.matmul %25, %24, %cst_20 {dimension_numbers = #tpu.dot_dimension_numbers<[1], [0], [0], [1], [0, 0, 1, 1], [], []>} : vector<8x8xbf16>, vector<8x256xbf16>, vector<8x256xf32> -> vector<8x256xf32>
    %c0_21 = arith.constant 0 : index
    %c0_22 = arith.constant 0 : index
    %27 = vector.load %arg9[%c0_21, %c0_22] : memref<8x1xf32, #tpu.memory_space<vmem>>, vector<8x1xf32>
    %28 = vector.broadcast %27 : vector<8x1xf32> to vector<8x256xf32>
    %29 = arith.addf %26, %28 : vector<8x256xf32>
    %c0_23 = arith.constant 0 : index
    %c0_24 = arith.constant 0 : index
    %30 = vector.load %arg10[%c0_23, %c0_24] : memref<8x256xf32, #tpu.memory_space<vmem>>, vector<8x256xf32>
    tpu.vector_store %arg10[%c0_23, %c0_24], %29 {strides = array<i32>} : memref<8x256xf32, #tpu.memory_space<vmem>>, vector<8x256xf32>,
    return
  }
  func.func @transform_0(%arg0: i32) -> (i32, i32) {
    %c0_i32 = arith.constant 0 : i32
    %c0_i32_0 = arith.constant 0 : i32
    return %c0_i32, %arg0 : i32, i32
  }
  func.func @transform_1(%arg0: i32) -> (i32, i32) {
    %c0_i32 = arith.constant 0 : i32
    %c0_i32_0 = arith.constant 0 : i32
    %c0_i32_1 = arith.constant 0 : i32
    return %c0_i32, %c0_i32_0 : i32, i32
  }
  func.func @transform_2(%arg0: i32) -> (i32, i32) {
    %c0_i32 = arith.constant 0 : i32
    %c0_i32_0 = arith.constant 0 : i32
    %c0_i32_1 = arith.constant 0 : i32
    return %c0_i32, %c0_i32_0 : i32, i32
  }
  func.func @transform_3(%arg0: i32) -> (i32, i32) {
    %c0_i32 = arith.constant 0 : i32
    %c0_i32_0 = arith.constant 0 : i32
    %c0_i32_1 = arith.constant 0 : i32
    return %c0_i32, %c0_i32_0 : i32, i32
  }
  func.func @transform_4(%arg0: i32) -> (i32, i32) {
    %c0_i32 = arith.constant 0 : i32
    %c0_i32_0 = arith.constant 0 : i32
    %c0_i32_1 = arith.constant 0 : i32
    return %c0_i32, %c0_i32_0 : i32, i32
  }
  func.func @transform_5(%arg0: i32) -> (i32, i32) {
    %c0_i32 = arith.constant 0 : i32
    %c0_i32_0 = arith.constant 0 : i32
    %c0_i32_1 = arith.constant 0 : i32
    return %c0_i32, %c0_i32_0 : i32, i32
  }
  func.func @transform_6(%arg0: i32) -> (i32, i32) {
    %c0_i32 = arith.constant 0 : i32
    %c0_i32_0 = arith.constant 0 : i32
    %c0_i32_1 = arith.constant 0 : i32
    return %c0_i32, %c0_i32_0 : i32, i32
  }
  func.func @transform_7(%arg0: i32) -> (i32, i32) {
    %c0_i32 = arith.constant 0 : i32
    %c0_i32_0 = arith.constant 0 : i32
    %c0_i32_1 = arith.constant 0 : i32
    return %c0_i32, %c0_i32_0 : i32, i32
  }
  func.func @transform_8(%arg0: i32) -> (i32, i32) {
    %c0_i32 = arith.constant 0 : i32
    %c0_i32_0 = arith.constant 0 : i32
    %c0_i32_1 = arith.constant 0 : i32
    return %c0_i32, %c0_i32_0 : i32, i32
  }
  func.func @transform_9(%arg0: i32) -> (i32, i32) {
    %c0_i32 = arith.constant 0 : i32
    %c0_i32_0 = arith.constant 0 : i32
    return %c0_i32, %arg0 : i32, i32
  }
}

</mosaic_0001>

<bundles_post_ra>
// kernel: _ikmlp_forward_impl.1
= control target key start
LH: loop header
LB: loop body
LE: loop exit
PB: predicated region body
PF: predicated region fallthrough
CT: control target
= control target key end

     0   :  { %s890_s30 = smov 0   ;;  %s981_s0 = inlined_call_operand.vmem [shape: bf16[3,512], index: 0, kind: input, shape index: {}]   ;;  %s982_s1 = inlined_call_operand.vmem [shape: bf16[64,3], index: 1, kind: input, shape index: {}]   ;;  %s983_s2 = inlined_call_operand.vmem [shape: f32[64,1], index: 2, kind: input, shape index: {}]   ;;  %s984_s3 = inlined_call_operand.vmem [shape: bf16[16,64], index: 3, kind: input, shape index: {}]   ;;  %s985_s4 = inlined_call_operand.vmem [shape: f32[16,1], index: 4, kind: input, shape index: {}]   ;;  %s986_s5 = inlined_call_operand.vmem [shape: bf16[8,16], index: 5, kind: input, shape index: {}]   ;;  %s987_s6 = inlined_call_operand.vmem [shape: f32[8,1], index: 6, kind: input, shape index: {}]   ;;  %s988_s7 = inlined_call_operand.vmem [shape: bf16[8,8], index: 7, kind: input, shape index: {}]   ;;  %s989_s8 = inlined_call_operand.vmem [shape: f32[8,1], index: 8, kind: input, shape index: {}]   ;;  %s990_s9 = inlined_call_operand.vmem [shape: f32[8,512], index: 9, kind: output, shape index: {}]  }
   0x1 LB: > { %s788_s10 = sadd.s32 4294967295, %s836_s30   ;;  %p792_p0 = scmp.ge.s32.totalorder %s836_s30, 1  ;;  %s836_s30 = sphi %s890_s30, %s19_s30  }
   0x2   : > { %p288_p1 = scmp.lt.s32.totalorder %s836_s30, 3 }
   0x4   : > { %p289_p2 = pnand %p792_p0, %p288_p1 }
   0x5   : > { %s793_s11 = sshll.u32 (!%p289_p2), %s788_s10, 1  ;;  %vm436_vm0 = vcmask (!%p289_p2), 1040384   ;;  %v838_v0 = vmov (!%p289_p2), 0   ;;  %vm437_vm1 = vcmask (!%p289_p2), 1041408   ;;  %v839_v1 = vmov (!%p289_p2), 65535   ;;  %v346_v3 = vld [vmem:[%s983_s2] sm:$0xff] (!%p289_p2) }
   0x6   : > { %292 = sbr.rel (%p289_p2) target bundleno = 938 (0x3aa), region = 56  ;;  %p325_p3 = scmp.lt.s32.totalorder (!%p289_p2), %s793_s11, 3  ;;  %478 = vmatprep.mubr.bf16.mxu0 (!%p289_p2), %v838_v0  ;;  %823 = vset.pattern.permute.xlu0 (!%p289_p2), %v838_v0  ;;  %v438_v2 = vsel (!%p289_p2), %vm436_vm0, 4294967295, %v839_v1  ;;  %v348_v4 = vld [vmem:[%s983_s2 + $0x10] sm:$0xff] (!%p289_p2)  ;;  %v347_v7 = vld [vmem:[%s983_s2 + $0x8] sm:$0xff] (!%p289_p2)  ;;  %v349_v8 = vld [vmem:[%s983_s2 + $0x18] sm:$0xff] (!%p289_p2) }
   0x7   : > { %824 = vset.pattern.permute.xlu1 (!%p289_p2), %v838_v0  ;;  %598 = vmatprep.mubr.bf16.mxu1 (!%p289_p2), %v838_v0  ;;  %v439_v5 = vsel (!%p289_p2), %vm437_vm1, %v438_v2, 0  ;;  %v350_v12 = vld [vmem:[%s983_s2 + $0x20] sm:$0xff] (!%p289_p2)  ;;  %v351_v13 = vld [vmem:[%s983_s2 + $0x28] sm:$0xff] (!%p289_p2)  ;;  %vm423_vm2 = vcmask (!%p289_p2), 23552   ;;  %v352_v15 = vld [vmem:[%s983_s2 + $0x30] sm:$0xff] (!%p289_p2)  ;;  %vm562_vm3 = vcmask (!%p289_p2), 523264  }
   0x8   : > { %356 = vperm.xlu0 (!%p289_p2), %823, %v346_v3   ;;  %366 = vperm.xlu1 (!%p289_p2), %824, %v348_v4   ;;  %v825_v14 = vld [vmem:[%s982_s1] sm:$0xff] (!%p289_p2)   ;;  %v353_v16 = vld [vmem:[%s983_s2 + $0x38] sm:$0xff] (!%p289_p2)  ;;  %v546_v18 = vld [vmem:[%s985_s4 + $0x8] sm:$0xff] (!%p289_p2)  ;;  %vm622_vm4 = vcmask (!%p289_p2), 130048   ;;  %vm682_vm5 = vcmask (!%p289_p2), 1043456   ;;  %vm678_vm6 = vcmask (!%p289_p2), 64512  }
   0x9   : > { %v545_v17 = vld [vmem:[%s985_s4] sm:$0xff] (!%p289_p2)  ;;  %v826_v19 = vld [vmem:[%s982_s1 + $0x8] sm:$0xff] (!%p289_p2)   ;;  %v827_v22 = vld [vmem:[%s982_s1 + $0x10] sm:$0xff] (!%p289_p2)  }
   0xa   : > { %v616_v20 = vld [vmem:[%s987_s6] sm:$0xff] (!%p289_p2)  ;;  %v828_v23 = vld [vmem:[%s982_s1 + $0x18] sm:$0xff] (!%p289_p2)  }
   0xb   : > { %v672_v21 = vld [vmem:[%s989_s8] sm:$0xff] (!%p289_p2) }
   0xc   : > { %361 = vperm.xlu0 (!%p289_p2), %823, %v347_v7   ;;  %371 = vperm.xlu1 (!%p289_p2), %824, %v349_v8  }
   0xd   : > { %s992_s11 = smov (!%p325_p3, %s793_s11), 3 }
   0xe   : > { %s794_s12 = sshll.u32 %s992_s11, 1  ;;  %s796_s16 = sshll.u32 %s992_s11, 3 }
   0xf   : > { %s328_s19 = scalar_lea.vmem %s981_s0, %s794_s12 }
  0x10   : > { %v801_v6 = vld.sshfl [vmem:[%s328_s19] sm:$0x33 pattern:$0x76325410]  ;;  %376 = vperm.xlu0 %823, %v350_v12   ;;  %381 = vperm.xlu1 %824, %v351_v13   ;;  %s334_s19 = scalar_lea.vmem %s990_s9, %s796_s16 }
  0x11   : > { %v422_v9 = vcombine.high %v801_v6, %v801_v6  ;;  %v441_v10 = vand.u32 %v801_v6, %v439_v5 }
  0x13   : > { %v444_v11 = vand.u32 %v439_v5, %v422_v9 }
  0x14   : > { %386 = vperm.xlu0 %823, %v352_v15   ;;  %391 = vperm.xlu1 %824, %v353_v16  }
  0x15   : > { %446 = vmatprep.subr.bf16.mxu0 %v444_v11 }
  0x16   : > { %447 = vmatpush1.bf16.msra.mxu0 %v441_v10 }
  0x18   : > { %549 = vperm.xlu0 %823, %v545_v17   ;;  %554 = vperm.xlu1 %824, %v546_v18  }
  0x19   : > { %802 = vmatmul.mubr.msk.bf16.vlgmr.msra.gmra.mrb[0].mxu0 %vm423_vm2, %v825_v14 }
  0x1a   : > { %488 = vmatprep.mubr.bf16.mxu0 %v838_v0 }
  0x1c   : > { %619 = vperm.xlu0 %823, %v616_v20   ;;  %675 = vperm.xlu1 %824, %v672_v21  }
  0x21   : > { %803 = vmatmul.mubr.msk.bf16.gmra.mrb[4].mxu0 %vm423_vm2, %v826_v19 }
  0x22   : > { %498 = vmatprep.mubr.bf16.mxu0 %v838_v0 }
  0x29   : > { %804 = vmatmul.mubr.msk.bf16.gmra.mrb[8].mxu0 %vm423_vm2, %v827_v22 }
  0x2a   : > { %508 = vmatprep.mubr.bf16.mxu0 %v838_v0 }
  0x31   : > { %805 = vmatmul.mubr.msk.bf16.gmra.mrb[12].mxu0 %vm423_vm2, %v828_v23 }
  0x87   : > { %v357_v24 = vpop.permute.xlu0 %356  ;;  %v367_v33 = vpop.permute.xlu1 %366 }
  0x8b   : > { %v362_v28 = vpop.permute.xlu0 %361  ;;  %v372_v44 = vpop.permute.xlu1 %371 }
  0x8f   : > { %v377_v55 = vpop.permute.xlu0 %376  ;;  %v382_v60 = vpop.permute.xlu1 %381 }
  0x93   : > { %v387_v8 = vpop.permute.xlu0 %386  ;;  %v392_v13 = vpop.permute.xlu1 %391 }
  0xec   : > { %v480_v25 = vpop.f32.mrb[0].mxu0 }
  0xed   : > { %v481_v26 = vadd.f32 %v480_v25, %v357_v24  ;;  %v482_v27 = vpop.f32.mrb[1].mxu0  ;;  %v829_v25 = vld [vmem:[%s984_s3] sm:$0xff]  }
  0xee   : > { %v483_v29 = vadd.f32 %v482_v27, %v357_v24  ;;  %v484_v30 = vpop.f32.mrb[2].mxu0 }
  0xef   : > { %v485_v31 = vadd.f32 %v484_v30, %v362_v28  ;;  %v486_v32 = vpop.f32.mrb[3].mxu0  ;;  %v519_v35 = vmax.f32 %v481_v26, 0.0  ;;  %v550_v26 = vpop.permute.xlu0 %549 }
  0xf0   : > { %v487_v34 = vadd.f32 %v486_v32, %v362_v28  ;;  %v520_v37 = vmax.f32 %v483_v29, 0.0  ;;  %v555_v30 = vpop.permute.xlu1 %554 }
  0xf1   : > { %v521_v36 = vmax.f32 %v485_v31, 0.0 }
  0xf2   : > { %v522_v38 = vmax.f32 %v487_v34, 0.0 }
  0xf3   : > { %v535_v39 = vpack.c.bf16 %v521_v36, %v519_v35 }
  0xf4   : > { %v490_v40 = vpop.f32.mrb[4].mxu0  ;;  %v536_v41 = vpack.c.bf16 %v522_v38, %v520_v37 }
  0xf5   : > { %v491_v42 = vadd.f32 %v490_v40, %v367_v33  ;;  %v492_v43 = vpop.f32.mrb[5].mxu0 }
  0xf6   : > { %v493_v45 = vadd.f32 %v492_v43, %v367_v33  ;;  %v494_v46 = vpop.f32.mrb[6].mxu0  ;;  %566 = vmatprep.subr.bf16.mxu1 %v536_v41  ;;  %v620_v43 = vpop.permute.xlu0 %619 }
  0xf7   : > { %v495_v47 = vadd.f32 %v494_v46, %v372_v44  ;;  %v496_v48 = vpop.f32.mrb[7].mxu0  ;;  %567 = vmatpush1.bf16.msra.mxu1 %v535_v39  ;;  %v523_v50 = vmax.f32 %v491_v42, 0.0  ;;  %v615_v42 = vld [vmem:[%s986_s5] sm:$0xf] }
  0xf8   : > { %v497_v49 = vadd.f32 %v496_v48, %v372_v44  ;;  %v524_v52 = vmax.f32 %v493_v45, 0.0 }
  0xf9   : > { %v525_v51 = vmax.f32 %v495_v47, 0.0 }
  0xfa   : > { %v526_v53 = vmax.f32 %v497_v49, 0.0 }
  0xfb   : > { %v537_v54 = vpack.c.bf16 %v525_v51, %v523_v50 }
  0xfc   : > { %v538_v56 = vpack.c.bf16 %v526_v53, %v524_v52  ;;  %v500_v57 = vpop.f32.mrb[8].mxu0 }
  0xfd   : > { %v501_v58 = vadd.f32 %v500_v57, %v377_v55  ;;  %v502_v59 = vpop.f32.mrb[9].mxu0 }
  0xfe   : > { %v503_v61 = vadd.f32 %v502_v59, %v377_v55  ;;  %v504_v62 = vpop.f32.mrb[10].mxu0  ;;  %568 = vmatprep.subr.bf16.mxu1 %v538_v56  ;;  %v676_v55 = vpop.permute.xlu1 %675 }
  0xff   : > { %v505_v63 = vadd.f32 %v504_v62, %v382_v60  ;;  %v506_v1 = vpop.f32.mrb[11].mxu0  ;;  %569 = vmatpush1.bf16.msra.mxu1 %v537_v54  ;;  %v527_v3 = vmax.f32 %v501_v58, 0.0 }
 0x100   : > { %v507_v2 = vadd.f32 %v506_v1, %v382_v60  ;;  %v528_v5 = vmax.f32 %v503_v61, 0.0 }
 0x101   : > { %v529_v4 = vmax.f32 %v505_v63, 0.0 }
 0x102   : > { %v530_v6 = vmax.f32 %v507_v2, 0.0 }
 0x103   : > { %v539_v7 = vpack.c.bf16 %v529_v4, %v527_v3 }
 0x104   : > { %v540_v9 = vpack.c.bf16 %v530_v6, %v528_v5  ;;  %v510_v10 = vpop.f32.mrb[12].mxu0 }
 0x105   : > { %v511_v11 = vadd.f32 %v510_v10, %v387_v8  ;;  %v512_v12 = vpop.f32.mrb[13].mxu0 }
 0x106   : > { %v513_v14 = vadd.f32 %v512_v12, %v387_v8  ;;  %v514_v15 = vpop.f32.mrb[14].mxu0  ;;  %570 = vmatprep.subr.bf16.mxu1 %v540_v9 }
 0x107   : > { %v515_v16 = vadd.f32 %v514_v15, %v392_v13  ;;  %v516_v17 = vpop.f32.mrb[15].mxu0  ;;  %571 = vmatpush1.bf16.msra.mxu1 %v539_v7  ;;  %v531_v19 = vmax.f32 %v511_v11, 0.0 }
 0x108   : > { %v517_v18 = vadd.f32 %v516_v17, %v392_v13  ;;  %v532_v21 = vmax.f32 %v513_v14, 0.0 }
 0x109   : > { %v533_v20 = vmax.f32 %v515_v16, 0.0 }
 0x10a   : > { %v534_v22 = vmax.f32 %v517_v18, 0.0 }
 0x10b   : > { %v541_v23 = vpack.c.bf16 %v533_v20, %v531_v19 }
 0x10c   : > { %v542_v24 = vpack.c.bf16 %v534_v22, %v532_v21 }
 0x10e   : > { %572 = vmatprep.subr.bf16.mxu1 %v542_v24 }
 0x10f   : > { %573 = vmatpush1.bf16.msra.mxu1 %v541_v23 }
 0x112   : > { %807 = vmatmul.mubr.msk.bf16.vlgmr.msra.gmra.mrb[0].mxu1 %vm562_vm3, %v829_v25 }
 0x113   : > { %658 = vmatprep.mubr.bf16.mxu1 %v838_v0 }
 0x1e5   : > { %v600_v27 = vpop.f32.mrb[0].mxu1 }
 0x1e6   : > { %v601_v28 = vadd.f32 %v600_v27, %v550_v26  ;;  %v602_v29 = vpop.f32.mrb[1].mxu1 }
 0x1e7   : > { %v603_v31 = vadd.f32 %v602_v29, %v550_v26  ;;  %v604_v32 = vpop.f32.mrb[2].mxu1 }
 0x1e8   : > { %v605_v33 = vadd.f32 %v604_v32, %v555_v30  ;;  %v606_v34 = vpop.f32.mrb[3].mxu1  ;;  %v609_v36 = vmax.f32 %v601_v28, 0.0 }
 0x1e9   : > { %v607_v35 = vadd.f32 %v606_v34, %v555_v30  ;;  %v610_v38 = vmax.f32 %v603_v31, 0.0 }
 0x1ea   : > { %v611_v37 = vmax.f32 %v605_v33, 0.0 }
 0x1eb   : > { %v612_v39 = vmax.f32 %v607_v35, 0.0 }
 0x1ec   : > { %v613_v40 = vpack.c.bf16 %v611_v37, %v609_v36 }
 0x1ed   : > { %v614_v41 = vpack.c.bf16 %v612_v39, %v610_v38 }
 0x1ef   : > { %626 = vmatprep.subr.bf16.mxu1 %v614_v41 }
 0x1f0   : > { %627 = vmatpush1.bf16.msra.mxu1 %v613_v40 }
 0x1f3   : > { %808 = vmatmul.mubr.msk.bf16.vlgmr.msra.gmra.mrb[4].mxu1 %vm622_vm4, %v615_v42 }
 0x1f4   : > { %721 = vmatprep.mubr.bf16.mxu1 %v838_v0  ;;  %v671_v0 = vld [vmem:[%s988_s7] sm:$0xf] }
 0x2c6   : > { %v660_v44 = vpop.f32.mrb[4].mxu1 }
 0x2c7   : > { %v661_v45 = vadd.f32 %v660_v44, %v620_v43  ;;  %v662_v46 = vpop.f32.mrb[5].mxu1 }
 0x2c8   : > { %v663_v47 = vadd.f32 %v662_v46, %v620_v43  ;;  %v664_v48 = vpop.f32.mrb[6].mxu1 }
 0x2c9   : > { %v667_v49 = vmax.f32 %v661_v45, 0.0  ;;  %v665_v50 = vpop.f32.mrb[7].mxu1 }
 0x2ca   : > { %v668_v51 = vmax.f32 %v663_v47, 0.0 }
 0x2cb   : > { %v669_v52 = vpack.c.bf16 %v667_v49, %v667_v49 }
 0x2cc   : > { %v670_v53 = vpack.c.bf16 %v668_v51, %v668_v51 }
 0x2cd   : > { %v684_v54 = vsel %vm682_vm5, %v669_v52, 0 }
 0x2ce   : > { %809 = vmatprep.subr.msk.bf16.mxu1 %vm682_vm5, %v670_v53 }
 0x2cf   : > { %690 = vmatpush1.bf16.msra.mxu1 %v684_v54 }
 0x2d2   : > { %810 = vmatmul.mubr.msk.bf16.vlgmr.msra.gmra.mrb[8].mxu1 %vm678_vm6, %v671_v0 }
 0x3a5   : > { %v723_v56 = vpop.f32.mrb[8].mxu1 }
 0x3a6   : > { %v724_v57 = vadd.f32 %v723_v56, %v676_v55  ;;  %v725_v58 = vpop.f32.mrb[9].mxu1 }
 0x3a7   : > { %v726_v59 = vadd.f32 %v725_v58, %v676_v55  ;;  %v727_v60 = vpop.f32.mrb[10].mxu1 }
 0x3a8   : > { %730 = vst [vmem:[%s334_s19] sm:$0xff] %v724_v57  ;;  %v728_v61 = vpop.f32.mrb[11].mxu1 }
 0x3a9   : > { %731 = vst [vmem:[%s334_s19 + $0x8] sm:$0xff] %v726_v59 }
 0x3aa PF: > { %s19_s30 = sadd.s32 1, %s836_s30  }
 0x3ab   : > { %p16_p4 = scmp.ge.s32.totalorder %s19_s30, 4  }
 0x3ad   :  { %18 = sbr.rel (!%p16_p4) target bundleno = 1 (0x1), region = 86 }

</bundles_post_ra>
